<compile_context>
chip_gen: v6e
topology: v6e:2x2x1
jax: 0.10.0
libtpu: 0.0.40
codegen_flags: <defaults>
</compile_context>

<pallas_src>
import math

import jax
import jax.numpy as jnp
from jax.experimental import pallas as pl
from jax.experimental.pallas import tpu as pltpu

# ----------------------- synthetic (small) config -----------------------
BATCH = 2
SEQ = 8
HIDDEN = 32          # config.hidden_size
MLP_DIM = 64         # config.transformer['mlp_dim']
DROPOUT_RATE = 0.0   # inference semantics -> identity  # TODO(synk): training-mode dropout not implemented


# ----------------------- in-kernel math helpers -----------------------
def _erf(x):
    # Abramowitz & Stegun 7.1.26 (max abs err ~1.5e-7, fp32-exact here);
    # only exp / mul / add / where -> lowers cleanly to VPU + EUP.
    p = 0.3275911
    a1, a2, a3, a4, a5 = (0.254829592, -0.284496736, 1.421413741,
                          -1.453152027, 1.061405429)
    sgn = jnp.where(x >= 0.0, 1.0, -1.0)
    ax = jnp.abs(x)
    t = 1.0 / (1.0 + p * ax)
    poly = ((((a5 * t + a4) * t + a3) * t + a2) * t + a1) * t
    return sgn * (1.0 - poly * jnp.exp(-ax * ax))


def _gelu_exact(x):
    # matches torch.nn.functional.gelu default (erf-based "exact" GELU)
    return 0.5 * x * (1.0 + _erf(x * 0.7071067811865476))


# ----------------------- Pallas kernel -----------------------
def mlp_kernel(x_ref, w1_ref, b1_ref, w2_ref, b2_ref, o_ref):
    """Fused MLP forward on one (B*S, H) activation slab, fully VMEM-resident."""
    x = x_ref[...]                                                   # (B*S, H)
    u = jnp.dot(x, w1_ref[...], preferred_element_type=jnp.float32) + b1_ref[...]
    u = _gelu_exact(u)                                               # (B*S, MLP)
    # dropout(rate=0.0) -> identity
    y = jnp.dot(u, w2_ref[...], preferred_element_type=jnp.float32) + b2_ref[...]
    # dropout(rate=0.0) -> identity
    o_ref[...] = y.astype(o_ref.dtype)                               # (B*S, H)


# ----------------------- wrapper -----------------------
@jax.jit
def mlp_forward(x, w1, b1, w2, b2):
    B, S, H = x.shape
    x2 = x.reshape(B * S, H)  # collapse batch: one slab, one kernel launch
    vmem = pl.BlockSpec(memory_space=pltpu.MemorySpace.VMEM)
    out = pl.pallas_call(
        mlp_kernel,
        out_shape=jax.ShapeDtypeStruct((B * S, H), jnp.float32),
        in_specs=[vmem, vmem, vmem, vmem, vmem],
        out_specs=vmem,
    )(x2, w1, b1, w2, b2)
    return out.reshape(B, S, H)


# ----------------------- deterministic parameter init -----------------------
def init_params(key):
    def xavier_uniform(k, fan_in, fan_out):
        lim = math.sqrt(6.0 / (fan_in + fan_out))
        return jax.random.uniform(k, (fan_in, fan_out), jnp.float32, -lim, lim)

    k1, k2, k3, k4 = jax.random.split(key, 4)
    w1 = xavier_uniform(k1, HIDDEN, MLP_DIM)
    b1 = 1e-6 * jax.random.normal(k2, (1, MLP_DIM), jnp.float32)
    w2 = xavier_uniform(k3, MLP_DIM, HIDDEN)
    b2 = 1e-6 * jax.random.normal(k4, (1, HIDDEN), jnp.float32)
    return w1, b1, w2, b2


# ----------------------- plain-JAX reference (mirrors the torch forward) ----
def reference_forward(x, w1, b1, w2, b2):
    u = jax.nn.gelu(x @ w1 + b1, approximate=False)
    return u @ w2 + b2


# ----------------------- main -----------------------
if __name__ == "__main__":
    key = jax.random.PRNGKey(0)
    key, kx = jax.random.split(key)
    x = jax.random.normal(kx, (BATCH, SEQ, HIDDEN), jnp.float32)

    w1, b1, w2, b2 = init_params(key)

    out = mlp_forward(x, w1, b1, w2, b2)
    out = jax.block_until_ready(out)

    ref = reference_forward(x, w1, b1, w2, b2)
    assert out.shape == (BATCH, SEQ, HIDDEN)
    if not jnp.allclose(out, ref, atol=2e-5, rtol=2e-5):
        raise AssertionError("Pallas MLP output mismatch vs JAX reference")

    print("KERNEL_OK")
</pallas_src>

<mosaic_0001>
module attributes {stable_mosaic.version = 11 : i64} {
  func.func @mlp_kernel(%arg0: memref<16x32xf32, #tpu.memory_space<vmem>>, %arg1: memref<32x64xf32, #tpu.memory_space<vmem>>, %arg2: memref<1x64xf32, #tpu.memory_space<vmem>>, %arg3: memref<64x32xf32, #tpu.memory_space<vmem>>, %arg4: memref<1x32xf32, #tpu.memory_space<vmem>>, %arg5: memref<16x32xf32, #tpu.memory_space<vmem>>) attributes {dimension_semantics = [], scalar_prefetch = 0 : i64, scratch_operands = 0 : i64, tpu.core_type = #tpu.core_type<tc>} {
    %c0 = arith.constant 0 : index
    %c0_0 = arith.constant 0 : index
    %0 = vector.load %arg0[%c0, %c0_0] : memref<16x32xf32, #tpu.memory_space<vmem>>, vector<16x32xf32>
    %c0_1 = arith.constant 0 : index
    %c0_2 = arith.constant 0 : index
    %1 = vector.load %arg1[%c0_1, %c0_2] : memref<32x64xf32, #tpu.memory_space<vmem>>, vector<32x64xf32>
    %cst = arith.constant dense<0.000000e+00> : vector<16x64xf32>
    %2 = tpu.matmul %0, %1, %cst {dimension_numbers = #tpu.dot_dimension_numbers<[1], [0], [0], [1], [0, 0, 1, 1], [], []>} : vector<16x32xf32>, vector<32x64xf32>, vector<16x64xf32> -> vector<16x64xf32>
    %c0_3 = arith.constant 0 : index
    %c0_4 = arith.constant 0 : index
    %3 = vector.load %arg2[%c0_3, %c0_4] : memref<1x64xf32, #tpu.memory_space<vmem>>, vector<1x64xf32>
    %4 = vector.broadcast %3 : vector<1x64xf32> to vector<16x64xf32>
    %5 = arith.addf %2, %4 : vector<16x64xf32>
    %cst_5 = arith.constant 5.000000e-01 : f32
    %6 = vector.broadcast %cst_5 : f32 to vector<16x64xf32>
    %7 = arith.mulf %6, %5 : vector<16x64xf32>
    %cst_6 = arith.constant 0.707106769 : f32
    %8 = vector.broadcast %cst_6 : f32 to vector<16x64xf32>
    %9 = arith.mulf %5, %8 : vector<16x64xf32>
    %cst_7 = arith.constant 0.000000e+00 : f32
    %10 = vector.broadcast %cst_7 : f32 to vector<16x64xf32>
    %11 = arith.cmpf oge, %9, %10 : vector<16x64xf32>
    %cst_8 = arith.constant 1.000000e+00 : f32
    %cst_9 = arith.constant -1.000000e+00 : f32
    %12 = vector.broadcast %cst_8 : f32 to vector<16x64xf32>
    %13 = vector.broadcast %cst_9 : f32 to vector<16x64xf32>
    %14 = arith.select %11, %12, %13 : vector<16x64xi1>, vector<16x64xf32>
    %15 = math.absf %9 : vector<16x64xf32>
    %cst_10 = arith.constant 0.327591091 : f32
    %16 = vector.broadcast %cst_10 : f32 to vector<16x64xf32>
    %17 = arith.mulf %16, %15 : vector<16x64xf32>
    %cst_11 = arith.constant 1.000000e+00 : f32
    %18 = vector.broadcast %cst_11 : f32 to vector<16x64xf32>
    %19 = arith.addf %18, %17 : vector<16x64xf32>
    %cst_12 = arith.constant 1.000000e+00 : f32
    %20 = vector.broadcast %cst_12 : f32 to vector<16x64xf32>
    %21 = arith.divf %20, %19 : vector<16x64xf32>
    %cst_13 = arith.constant 1.06140542 : f32
    %22 = vector.broadcast %cst_13 : f32 to vector<16x64xf32>
    %23 = arith.mulf %22, %21 : vector<16x64xf32>
    %cst_14 = arith.constant -1.45315206 : f32
    %24 = vector.broadcast %cst_14 : f32 to vector<16x64xf32>
    %25 = arith.addf %23, %24 : vector<16x64xf32>
    %26 = arith.mulf %25, %21 : vector<16x64xf32>
    %cst_15 = arith.constant 1.42141378 : f32
    %27 = vector.broadcast %cst_15 : f32 to vector<16x64xf32>
    %28 = arith.addf %26, %27 : vector<16x64xf32>
    %29 = arith.mulf %28, %21 : vector<16x64xf32>
    %cst_16 = arith.constant -0.284496725 : f32
    %30 = vector.broadcast %cst_16 : f32 to vector<16x64xf32>
    %31 = arith.addf %29, %30 : vector<16x64xf32>
    %32 = arith.mulf %31, %21 : vector<16x64xf32>
    %cst_17 = arith.constant 0.254829586 : f32
    %33 = vector.broadcast %cst_17 : f32 to vector<16x64xf32>
    %34 = arith.addf %32, %33 : vector<16x64xf32>
    %35 = arith.mulf %34, %21 : vector<16x64xf32>
    %cst_18 = arith.constant 0.000000e+00 : f32
    %36 = vector.broadcast %cst_18 : f32 to vector<16x64xf32>
    %37 = arith.subf %36, %15 : vector<16x64xf32>
    %38 = arith.mulf %37, %15 : vector<16x64xf32>
    %39 = math.exp %38 : vector<16x64xf32>
    %40 = arith.mulf %35, %39 : vector<16x64xf32>
    %cst_19 = arith.constant 1.000000e+00 : f32
    %41 = vector.broadcast %cst_19 : f32 to vector<16x64xf32>
    %42 = arith.subf %41, %40 : vector<16x64xf32>
    %43 = arith.mulf %14, %42 : vector<16x64xf32>
    %cst_20 = arith.constant 1.000000e+00 : f32
    %44 = vector.broadcast %cst_20 : f32 to vector<16x64xf32>
    %45 = arith.addf %44, %43 : vector<16x64xf32>
    %46 = arith.mulf %7, %45 : vector<16x64xf32>
    %c0_21 = arith.constant 0 : index
    %c0_22 = arith.constant 0 : index
    %47 = vector.load %arg3[%c0_21, %c0_22] : memref<64x32xf32, #tpu.memory_space<vmem>>, vector<64x32xf32>
    %cst_23 = arith.constant dense<0.000000e+00> : vector<16x32xf32>
    %48 = tpu.matmul %46, %47, %cst_23 {dimension_numbers = #tpu.dot_dimension_numbers<[1], [0], [0], [1], [0, 0, 1, 1], [], []>} : vector<16x64xf32>, vector<64x32xf32>, vector<16x32xf32> -> vector<16x32xf32>
    %c0_24 = arith.constant 0 : index
    %c0_25 = arith.constant 0 : index
    %49 = vector.load %arg4[%c0_24, %c0_25] : memref<1x32xf32, #tpu.memory_space<vmem>>, vector<1x32xf32>
    %50 = vector.broadcast %49 : vector<1x32xf32> to vector<16x32xf32>
    %51 = arith.addf %48, %50 : vector<16x32xf32>
    %c0_26 = arith.constant 0 : index
    %c0_27 = arith.constant 0 : index
    %52 = vector.load %arg5[%c0_26, %c0_27] : memref<16x32xf32, #tpu.memory_space<vmem>>, vector<16x32xf32>
    tpu.vector_store %arg5[%c0_26, %c0_27], %51 {strides = array<i32>} : memref<16x32xf32, #tpu.memory_space<vmem>>, vector<16x32xf32>,
    return
  }
}

</mosaic_0001>

<bundles_post_ra>
// kernel: mlp_forward.1
= control target key start
LH: loop header
LB: loop body
LE: loop exit
PB: predicated region body
PF: predicated region fallthrough
CT: control target
= control target key end

     0   :  { %vm34_vm0 = vcmask 261120   ;;  %s460_s0 = inlined_call_operand.vmem [shape: f32[16,32], index: 0, kind: input, shape index: {}]   ;;  %s461_s1 = inlined_call_operand.vmem [shape: f32[32,64], index: 1, kind: input, shape index: {}]   ;;  %s462_s2 = inlined_call_operand.vmem [shape: f32[1,64], index: 2, kind: input, shape index: {}]   ;;  %s463_s3 = inlined_call_operand.vmem [shape: f32[64,32], index: 3, kind: input, shape index: {}]   ;;  %s464_s4 = inlined_call_operand.vmem [shape: f32[1,32], index: 4, kind: input, shape index: {}]   ;;  %s465_s5 = inlined_call_operand.hbm [shape: f32[16,32], index: 5, kind: output, shape index: {}]  }
   0x1   :  { %v26_v0 = vld [vmem:[%s461_s1 + $0x18] sm:$0xff]  ;;  %v25_v1 = vld [vmem:[%s461_s1 + $0x10] sm:$0xff]  ;;  %v21_v2 = vld [vmem:[%s460_s0] sm:$0xff] }
   0x2   :  { %307 = vmatprep.subr.mxu0 %v26_v0  ;;  %v24_v3 = vld [vmem:[%s461_s1 + $0x8] sm:$0xff]  ;;  %315 = vmatprep.mubr.msk.f32.mxu0 %vm34_vm0, %v21_v2 }
   0x3   :  { %308 = vmatpush3.msra.mxu0 %v26_v0 }
   0x4   :  { %10 = vsyncpa [#allocation3], 0  ;;  %309 = vmatprep.subr.mxu0 %v25_v1  ;;  %v23_v4 = vld [vmem:[%s461_s1] sm:$0xff]  ;;  %v22_v5 = vld [vmem:[%s460_s0 + $0x8] sm:$0xff]  ;;  %v371_v57 = vmov -1.0   ;;  %vm185_vm3 = vcmask 523264  }
   0x5   :  { %310 = vmatpush3.msra.mxu0 %v25_v1  ;;  %v177_v6 = vld [vmem:[%s463_s3 + $0x38] sm:$0xff]  ;;  %v176_v7 = vld [vmem:[%s463_s3 + $0x30] sm:$0xff]  ;;  %v175_v8 = vld [vmem:[%s463_s3 + $0x28] sm:$0xff]  ;;  %s372_s21 = smov [#allocation2]  }
   0x6   :  { %311 = vmatprep.subr.mxu0 %v24_v3  ;;  %318 = vmatprep.subr.mxu1 %v177_v6  ;;  %v174_v9 = vld [vmem:[%s463_s3 + $0x20] sm:$0xff]  ;;  %v173_v10 = vld [vmem:[%s463_s3 + $0x18] sm:$0xff]  ;;  %v172_v11 = vld [vmem:[%s463_s3 + $0x10] sm:$0xff]  ;;  %s274_s22 = sshll.u32 %s372_s21, 4  ;;  %s275_s22 = int_to_ptr.vmem [resolvable:$true] %s274_s22 }
   0x7   :  { %312 = vmatpush3.msra.mxu0 %v24_v3  ;;  %319 = vmatpush3.msra.mxu1 %v177_v6  ;;  %v171_v12 = vld [vmem:[%s463_s3 + $0x8] sm:$0xff]  ;;  %v170_v13 = vld [vmem:[%s463_s3] sm:$0xff]  ;;  %s349_s23 = scalar_lea.vmem %s275_s22, 256  ;;  %p354_p1 = scmp.lt.s32.totalorder %s275_s22, %s275_s22 }
   0x8   :  { %313 = vmatprep.subr.mxu0 %v23_v4  ;;  %320 = vmatprep.subr.mxu1 %v176_v7  ;;  %v285_v14 = vld [vmem:[%s462_s2] ss:$0 sm:$0xff]  ;;  %p350_p0 = scmp.ne.s32.totalorder %s275_s22, %s349_s23  ;;  %p355_p2 = scmp.lt.s32.totalorder %s349_s23, %s349_s23 }
   0x9   :  { %314 = vmatpush3.msra.mxu0 %v23_v4  ;;  %321 = vmatpush3.msra.mxu1 %v176_v7  ;;  %v288_v6 = vld [vmem:[%s464_s4] ss:$0 sm:$0xff] }
   0xa   :  { %316 = vmatmul.mubr.msk.f32.vlgmr.msra.gmra.mxu0 %vm34_vm0, %v22_v5  ;;  %322 = vmatprep.subr.mxu1 %v175_v8  ;;  %p356_p3 = por %p355_p2, %p354_p1 }
   0xb   :  { %323 = vmatpush3.msra.mxu1 %v175_v8 }
   0xc   :  { %324 = vmatprep.subr.mxu1 %v174_v9  ;;  %p357_p4 = pnand %p356_p3, %p350_p0 }
   0xd   :  { %325 = vmatpush3.msra.mxu1 %v174_v9 }
   0xe   :  { %326 = vmatprep.subr.mxu1 %v173_v10 }
   0xf   :  { %327 = vmatpush3.msra.mxu1 %v173_v10 }
  0x10   :  { %328 = vmatprep.subr.mxu1 %v172_v11 }
  0x11   :  { %329 = vmatpush3.msra.mxu1 %v172_v11 }
  0x12   :  { %330 = vmatprep.subr.mxu1 %v171_v12 }
  0x13   :  { %331 = vmatpush3.msra.mxu1 %v171_v12 }
  0x14   :  { %332 = vmatprep.subr.mxu1 %v170_v13 }
  0x15   :  { %333 = vmatpush3.msra.mxu1 %v170_v13 }
  0xca   :  { %v317_v15 = vpop.f32.mrf.mxu0 }
  0xcb   :  { %v113_v16 = vadd.f32 %v317_v15, %v285_v14 }
  0xcc   :  { %v107_v17 = vpop.f32.mrf.mxu0 }
  0xcd   :  { %v119_v18 = vmul.f32 0.70710677, %v113_v16  ;;  %v108_v19 = vadd.f32 %v285_v14, %v107_v17  ;;  %v117_v3 = vmul.f32 0.5, %v113_v16 }
  0xcf   :  { %v125_v20 = vand.u32 2147483647, %v119_v18  ;;  %v118_v21 = vmul.f32 0.70710677, %v108_v19  ;;  %vm121_vm1 = vcmp.ge.f32.partialorder %v119_v18, 0.0  ;;  %v116_v1 = vmul.f32 0.5, %v108_v19 }
  0xd0   :  { %v123_v58 = vsel %vm121_vm1, 1.0, %v371_v57 }
  0xd1   :  { %v127_v22 = vmul.f32 0.3275911, %v125_v20  ;;  %v124_v23 = vand.u32 2147483647, %v118_v21  ;;  %v153_v27 = vsub.f32 0.0, %v125_v20  ;;  %vm120_vm2 = vcmp.ge.f32.partialorder %v118_v21, 0.0 }
  0xd2   :  { %v122_v62 = vsel %vm120_vm2, 1.0, %v371_v57 }
  0xd3   :  { %v129_v24 = vadd.f32 1.0, %v127_v22  ;;  %v126_v25 = vmul.f32 0.3275911, %v124_v23  ;;  %v152_v28 = vsub.f32 0.0, %v124_v23  ;;  %v155_v29 = vmul.f32 %v153_v27, %v125_v20 }
  0xd5   :  { %341 = vrcp.f32 %v129_v24  ;;  %v128_v26 = vadd.f32 1.0, %v126_v25  ;;  %v154_v31 = vmul.f32 %v152_v28, %v124_v23  ;;  %v158_v33 = vmul.f32 1.442695, %v155_v29 }
  0xd7   :  { %343 = vrcp.f32 %v128_v26  ;;  %v156_v36 = vmul.f32 1.442695, %v154_v31 }
  0xd8   :  { %345 = vpow2.f32 %v158_v33 }
  0xd9   :  { %347 = vpow2.f32 %v156_v36 }
  0xe2   :  { %v342_v30 = vpop.eup %341 }
  0xe3   :  { %v135_v32 = vmul.f32 1.0614054, %v342_v30 }
  0xe4   :  { %v344_v34 = vpop.eup %343 }
  0xe5   :  { %v137_v35 = vadd.f32 -1.4531521, %v135_v32  ;;  %v134_v37 = vmul.f32 1.0614054, %v344_v34  ;;  %v346_v51 = vpop.eup %345 }
  0xe6   :  { %v348_v55 = vpop.eup %347 }
  0xe7   :  { %v139_v38 = vmul.f32 %v342_v30, %v137_v35  ;;  %v136_v39 = vadd.f32 -1.4531521, %v134_v37 }
  0xe9   :  { %v141_v40 = vadd.f32 1.4214138, %v139_v38  ;;  %v138_v41 = vmul.f32 %v344_v34, %v136_v39 }
  0xeb   :  { %v143_v42 = vmul.f32 %v342_v30, %v141_v40  ;;  %v140_v43 = vadd.f32 1.4214138, %v138_v41 }
  0xed   :  { %v145_v44 = vadd.f32 -0.28449672, %v143_v42  ;;  %v142_v45 = vmul.f32 %v344_v34, %v140_v43 }
  0xef   :  { %v147_v46 = vmul.f32 %v342_v30, %v145_v44  ;;  %v144_v47 = vadd.f32 -0.28449672, %v142_v45 }
  0xf1   :  { %v149_v48 = vadd.f32 0.2548296, %v147_v46  ;;  %v146_v49 = vmul.f32 %v344_v34, %v144_v47 }
  0xf3   :  { %v151_v50 = vmul.f32 %v342_v30, %v149_v48  ;;  %v148_v52 = vadd.f32 0.2548296, %v146_v49 }
  0xf5   :  { %v161_v53 = vmul.f32 %v346_v51, %v151_v50  ;;  %v150_v54 = vmul.f32 %v344_v34, %v148_v52 }
  0xf7   :  { %v163_v56 = vsub.f32 1.0, %v161_v53  ;;  %v160_v59 = vmul.f32 %v348_v55, %v150_v54 }
  0xf9   :  { %v165_v60 = vmul.f32 %v163_v56, %v123_v58  ;;  %v162_v61 = vsub.f32 1.0, %v160_v59 }
  0xfb   :  { %v164_v63 = vmul.f32 %v162_v61, %v122_v62  ;;  %v167_v0 = vadd.f32 1.0, %v165_v60 }
  0xfd   :  { %v166_v2 = vadd.f32 1.0, %v164_v63  ;;  %v169_v5 = vmul.f32 %v167_v0, %v117_v3 }
  0xff   :  { %v168_v4 = vmul.f32 %v166_v2, %v116_v1 }
 0x101   :  { %334 = vmatprep.mubr.msk.f32.mxu1 %vm185_vm3, %v168_v4 }
 0x102   :  { %335 = vmatmul.mubr.msk.f32.vlgmr.msra.gmra.mxu1 %vm185_vm3, %v169_v5 }
 0x1c2   :  { %v336_v7 = vpop.f32.mrf.mxu1 }
 0x1c3   :  { %v264_v8 = vadd.f32 %v336_v7, %v288_v6 }
 0x1c4   :  { %v258_v9 = vpop.f32.mrf.mxu1 }
 0x1c5   :  { %268 = vst.msk [vmem:[#allocation2 + $0x8] sm:$0xff] %vm34_vm0, %v264_v8  ;;  %v259_v10 = vadd.f32 %v288_v6, %v258_v9 }
 0x1c7   :  { %267 = vst.msk [vmem:[#allocation2] sm:$0xff] %vm34_vm0, %v259_v10 }
 0x1c8   :  { %360 = shalt.err (!%p357_p4)
}
 0x1c9   :  { %s373_s24 = smov 128   ;;  %s374_s4 = smov 8  }
 0x1ca   :  { %280 = dma.vmem_to_hbm [thread:$0]  %s275_s22, 256, %s465_s5, [#allocation3], %s373_s24, %s373_s24, %s374_s4  }
 0x1cb   :  { %369 = dma.done.wait [#allocation3], 256  }
 0x1cc   :  { %370 = vsyncadd [#allocation3], 4294967040 }
 0x1cd   :  { %284 = vsyncpa [#allocation3], 1 }

</bundles_post_ra>
